<compile_context>
chip_gen: v7x
topology: tpu7x:2x2x1
jax: 0.10.0
libtpu: 0.0.40
codegen_flags: <defaults>
</compile_context>

<pallas_src>
import jax
import jax.numpy as jnp
from jax.experimental import pallas as pl
from jax.experimental.pallas import tpu as pltpu


def _sublane_tile(dtype) -> int:
    """Minimum sublane multiple for the dtype (8 f32 / 16 bf16 / 32 int8)."""
    itemsize = jnp.dtype(dtype).itemsize
    return {4: 8, 2: 16, 1: 32}.get(itemsize, 8)


def _round_down(x: int, m: int) -> int:
    return (x // m) * m


def _lws_kernel(scale_ref, x_ref, o_ref):
    # scale_ref: (1, tile_c) block, x_ref/o_ref: (tile_b, tile_c) blocks.
    # Pure VPU elementwise multiply with a sublane broadcast of the scale row;
    # cast to the output dtype on store (x may be bf16 while scale is f32).
    o_ref[...] = (x_ref[...] * scale_ref[...]).astype(o_ref.dtype)


def learnable_weight_scaling(x, learned_norm, *, out_dtype=None,
                             target_block_bytes=8 << 20):
    """out = learned_norm * x  (scale row broadcast over batch)."""
    B, C = x.shape
    assert learned_norm.shape == (1, C), learned_norm.shape

    if out_dtype is None:
        out_dtype = jnp.result_type(x.dtype, learned_norm.dtype)
    out_dtype = jnp.dtype(out_dtype)

    elem_bytes = max(jnp.dtype(x.dtype).itemsize, out_dtype.itemsize)
    sublane = max(_sublane_tile(x.dtype), _sublane_tile(out_dtype))
    bytes_per_row = C * elem_bytes

    if sublane * bytes_per_row <= target_block_bytes:
        # ---- Full class-width path (the common case). ----
        # 1-D grid over batch; every block DMA is contiguous and the scale
        # block index never changes (fetched once, kept resident in VMEM).
        rows = target_block_bytes // max(bytes_per_row, 1)
        if rows >= B:
            tile_b = B                      # single block covers the batch
        else:
            tile_b = max(_round_down(rows, sublane), sublane)
        grid = (pl.cdiv(B, tile_b),)        # edge block (if any) is masked
        in_specs = [
            pl.BlockSpec((1, C), lambda i: (0, 0)),           # scale: constant
            pl.BlockSpec((tile_b, C), lambda i: (i, 0)),      # x: batch-tiled
        ]
        out_spec = pl.BlockSpec((tile_b, C), lambda i: (i, 0))
        dim_sem = ("parallel",)
    else:
        # ---- Very wide class dim: 2-D grid, class axis OUTERMOST so the
        # scale block index is invariant across the inner batch loop. ----
        tile_c = min(2048, _round_down(C, 128))
        rows = target_block_bytes // (tile_c * elem_bytes)
        if B <= sublane:
            tile_b = B
        else:
            tile_b = max(_round_down(min(rows, B), sublane), sublane)
        grid = (pl.cdiv(C, tile_c), pl.cdiv(B, tile_b))
        in_specs = [
            pl.BlockSpec((1, tile_c), lambda j, i: (0, j)),
            pl.BlockSpec((tile_b, tile_c), lambda j, i: (i, j)),
        ]
        out_spec = pl.BlockSpec((tile_b, tile_c), lambda j, i: (i, j))
        dim_sem = ("parallel", "parallel")

    return pl.pallas_call(
        _lws_kernel,
        out_shape=jax.ShapeDtypeStruct((B, C), out_dtype),
        grid_spec=pltpu.PrefetchScalarGridSpec(
            num_scalar_prefetch=0,
            grid=grid,
            in_specs=in_specs,
            out_specs=out_spec,
        ),
        compiler_params=pltpu.CompilerParams(
            # Fully independent axes -> shard across TensorCores where present.
            dimension_semantics=dim_sem,
            # Double-buffered ~8 MiB x + ~8 MiB out + scale row: ~33 MiB peak.
            # 48 MiB is safe on v7x (64 MiB physical) and trivially on v5e/v6e.
            vmem_limit_bytes=48 << 20,
        ),
    )(learned_norm, x)


if __name__ == "__main__":
    key = jax.random.PRNGKey(0)
    batch, num_classes = 2, 32

    # nn.Parameter(torch.ones(1, num_classes)), perturbed deterministically so
    # the broadcast multiply is actually exercised.
    k_x, k_s = jax.random.split(key)
    learned_norm = jnp.ones((1, num_classes), dtype=jnp.float32) \
        + 0.1 * jax.random.normal(k_s, (1, num_classes), dtype=jnp.float32)
    x = jax.random.normal(k_x, (batch, num_classes), dtype=jnp.float32)

    out = learnable_weight_scaling(x, learned_norm)
    out = jax.block_until_ready(out)

    ref = learned_norm * x
    assert out.shape == (batch, num_classes)
    assert out.dtype == ref.dtype
    assert jnp.allclose(out, ref, atol=1e-6, rtol=1e-6)

    # Mixed-precision path: bf16 activations with f32 scale (promoted f32 out).
    x_bf16 = x.astype(jnp.bfloat16)
    out_mixed = jax.block_until_ready(
        learnable_weight_scaling(x_bf16, learned_norm))
    ref_mixed = learned_norm * x_bf16.astype(jnp.float32)
    assert out_mixed.dtype == jnp.float32
    assert jnp.allclose(out_mixed, ref_mixed, atol=1e-2, rtol=1e-2)

    # Opt-in bf16 output to halve write traffic for bf16 activations.
    out_bf16 = jax.block_until_ready(
        learnable_weight_scaling(x_bf16, learned_norm, out_dtype=jnp.bfloat16))
    assert out_bf16.dtype == jnp.bfloat16
    assert jnp.allclose(out_bf16.astype(jnp.float32), ref_mixed,
                        atol=3e-2, rtol=3e-2)

    print("KERNEL_OK")
</pallas_src>

<mosaic_0001>
module attributes {stable_mosaic.version = 11 : i64} {
  func.func @_lws_kernel(%arg0: i32, %arg1: memref<1x32xf32, #tpu.memory_space<vmem>>, %arg2: memref<2x32xf32, #tpu.memory_space<vmem>>, %arg3: memref<2x32xf32, #tpu.memory_space<vmem>>) attributes {dimension_semantics = [#tpu.dimension_semantics<parallel>], iteration_bounds = array<i64: 1>, scalar_prefetch = 0 : i64, scratch_operands = 0 : i64, tpu.core_type = #tpu.core_type<tc>, window_params = [{pipeline_mode = #tpu.pipeline_mode<synchronous>, transform_indices = @transform_0, window_bounds = array<i64: 1, 32>}, {transform_indices = @transform_1, window_bounds = array<i64: 2, 32>}, {transform_indices = @transform_2, window_bounds = array<i64: 2, 32>}]} {
    %c0 = arith.constant 0 : index
    %c0_0 = arith.constant 0 : index
    %0 = vector.load %arg2[%c0, %c0_0] : memref<2x32xf32, #tpu.memory_space<vmem>>, vector<2x32xf32>
    %c0_1 = arith.constant 0 : index
    %c0_2 = arith.constant 0 : index
    %1 = vector.load %arg1[%c0_1, %c0_2] : memref<1x32xf32, #tpu.memory_space<vmem>>, vector<1x32xf32>
    %2 = vector.broadcast %1 : vector<1x32xf32> to vector<2x32xf32>
    %3 = arith.mulf %0, %2 : vector<2x32xf32>
    %c0_3 = arith.constant 0 : index
    %c0_4 = arith.constant 0 : index
    %4 = vector.load %arg3[%c0_3, %c0_4] : memref<2x32xf32, #tpu.memory_space<vmem>>, vector<2x32xf32>
    tpu.vector_store %arg3[%c0_3, %c0_4], %3 {strides = array<i32>} : memref<2x32xf32, #tpu.memory_space<vmem>>, vector<2x32xf32>,
    return
  }
  func.func @transform_0(%arg0: i32) -> (i32, i32) {
    %c0_i32 = arith.constant 0 : i32
    %c0_i32_0 = arith.constant 0 : i32
    %c0_i32_1 = arith.constant 0 : i32
    return %c0_i32, %c0_i32_0 : i32, i32
  }
  func.func @transform_1(%arg0: i32) -> (i32, i32) {
    %c0_i32 = arith.constant 0 : i32
    %c0_i32_0 = arith.constant 0 : i32
    return %arg0, %c0_i32 : i32, i32
  }
  func.func @transform_2(%arg0: i32) -> (i32, i32) {
    %c0_i32 = arith.constant 0 : i32
    %c0_i32_0 = arith.constant 0 : i32
    return %arg0, %c0_i32 : i32, i32
  }
}

</mosaic_0001>

<bundles_post_ra>
// kernel: tpu_custom_call.1
= control target key start
LH: loop header
LB: loop body
LE: loop exit
PB: predicated region body
PF: predicated region fallthrough
CT: control target
= control target key end

     0   :  { %7 = vsyncpa [#allocation3], 0  ;;  %s145_s0 = inlined_call_operand.hbm [shape: f32[1,32], index: 0, kind: input, shape index: {}]   ;;  %s146_s1 = inlined_call_operand.vmem [shape: f32[2,32], index: 1, kind: input, shape index: {}]   ;;  %s147_s2 = inlined_call_operand.hbm [shape: f32[2,32], index: 2, kind: output, shape index: {}]  }
   0x1   :  { %8 = vsyncpa [#allocation4], 0  ;;  %s101_s9 = smov [#allocation2]   ;;  %s53_s13 = scalar_lea.hbm %s145_s0, 16 }
   0x2   :  { %s15_s10 = sshll.u32 %s101_s9, 4  ;;  %p54_p0 = scmp.ne.s32.totalorder %s145_s0, %s53_s13  ;;  %s16_s10 = int_to_ptr.vmem [resolvable:$true] %s15_s10 }
   0x3   :  { %p57_p1 = scmp.lt.u32.totalorder %s53_s13, %s145_s0 }
   0x5   :  { %p59_p2 = pnand %p57_p1, %p54_p0 }
   0x7   :  { %62 = shalt.err (!%p59_p2)
}
   0x8   :  { %s63_s18 = scalar_lea.vmem %s16_s10, 16  ;;  %s67_s19 = scalar_lea.vmem %s16_s10, 32 }
   0x9   :  { %p64_p3 = scmp.ne.s32.totalorder %s16_s10, %s63_s18  ;;  %p68_p4 = scmp.lt.s32.totalorder %s16_s10, %s16_s10 }
   0xa   :  { %p69_p5 = scmp.lt.s32.totalorder %s67_s19, %s63_s18 }
   0xc   :  { %p70_p6 = por %p69_p5, %p68_p4 }
   0xe   :  { %p71_p7 = pnand %p70_p6, %p64_p3 }
  0x10   :  { %74 = shalt.err (!%p71_p7)
}
  0x11   :  { %18 = dma.hbm_to_vmem [thread:$0]  %s145_s0, 16, %s16_s10, [#allocation3]  }
  0x12   :  { %97 = dma.done.wait [#allocation3], 16  }
  0x13   :  { %98 = vsyncadd [#allocation3], 4294967280  ;;  %s102_s22 = smov [#allocation5]   ;;  %v24_v0 = vld [vmem:[%s146_s1] sm:$0x3]  ;;  %vm33_vm0 = vcmask 254976  }
  0x14   :  { %s41_s23 = sshll.u32 %s102_s22, 4  ;;  %v50_v1 = vld [vmem:[#allocation2] ss:$0 sm:$0xff]  ;;  %s42_s23 = int_to_ptr.vmem [resolvable:$true] %s41_s23 }
  0x15   :  { %v32_v2 = vmul.f32 %v50_v1, %v24_v0  ;;  %s75_s26 = scalar_lea.vmem %s42_s23, 32  ;;  %p80_p9 = scmp.lt.s32.totalorder %s42_s23, %s42_s23 }
  0x16   :  { %p76_p8 = scmp.ne.s32.totalorder %s42_s23, %s75_s26  ;;  %p81_p10 = scmp.lt.s32.totalorder %s75_s26, %s75_s26 }
  0x17   :  { %34 = vst.msk [vmem:[#allocation5] sm:$0x3] %vm33_vm0, %v32_v2 }
  0x18   :  { %p82_p11 = por %p81_p10, %p80_p9 }
  0x1a   :  { %p83_p12 = pnand %p82_p11, %p76_p8 }
  0x1c   :  { %86 = shalt.err (!%p83_p12)
}
  0x1d   :  { %s87_s28 = scalar_lea.hbm %s147_s2, 32 }
  0x1e   :  { %p88_p13 = scmp.ne.s32.totalorder %s147_s2, %s87_s28  ;;  %p91_p0 = scmp.lt.u32.totalorder %s87_s28, %s147_s2 }
  0x20   :  { %p93_p1 = pnand %p91_p0, %p88_p13 }
  0x22   :  { %96 = shalt.err (!%p93_p1)
}
  0x23   :  { %44 = dma.vmem_to_hbm [thread:$0]  %s42_s23, 32, %s147_s2, [#allocation4]  }
  0x24   :  { %99 = dma.done.wait [#allocation4], 32  }
  0x25   :  { %100 = vsyncadd [#allocation4], 4294967264 }
  0x26   :  { %48 = vsyncpa [#allocation3], 1 }
  0x27   :  { %49 = vsyncpa [#allocation4], 1 }

</bundles_post_ra>
